<compile_context>
chip_gen: v6e
topology: v6e:2x2x1
jax: 0.10.0
libtpu: 0.0.40
codegen_flags: <defaults>
</compile_context>

<pallas_src>
import functools

import jax
import jax.numpy as jnp
from jax.experimental import pallas as pl
from jax.experimental.pallas import tpu as pltpu


# ------------------------------ helpers --------------------------------------
def _round_up(x: int, m: int) -> int:
    return (x + m - 1) // m * m


def _sublane_quantum(dtype) -> int:
    return 16 if dtype == jnp.bfloat16 else 8


# ----------------------------- Pallas kernel ---------------------------------
def _mlp_fused_kernel(*refs, num_layers: int):
    """refs = (x_ref, w0, b0, w1, b1, ..., w_{L-1}, b_{L-1}, o_ref).

    Whole MLP in one shot: intermediate activations never touch HBM.
    Matmuls run on the MXU in the storage dtype (bf16 by default) with f32
    accumulation; the bias-add / ReLU epilogue runs in f32 on the VPU.
    """
    x_ref = refs[0]
    o_ref = refs[-1]

    h = x_ref[...]                                    # compute dtype (bf16)
    for i in range(num_layers):
        w_ref = refs[1 + 2 * i]
        b_ref = refs[2 + 2 * i]
        acc = jnp.dot(h, w_ref[...], preferred_element_type=jnp.float32)
        acc = acc + b_ref[...]                        # f32 bias, broadcast over batch
        if i != num_layers - 1:
            acc = jnp.maximum(acc, 0.0)               # ReLU in f32
            h = acc.astype(w_ref.dtype)               # back to bf16 for next MXU pass
        else:
            h = acc
    o_ref[...] = h.astype(o_ref.dtype)


def _mlp_pallas_call(x_pad, prepared_params, *, tile_m, out_dtype):
    """Fused pallas_call: batch-tiled x/out, VMEM-resident weights/biases."""
    num_layers = len(prepared_params)
    flat_params = []
    for w, b in prepared_params:
        flat_params += [w, b]

    b_pad, k0_pad = x_pad.shape
    n_out_pad = prepared_params[-1][0].shape[1]
    grid = (b_pad // tile_m,)

    in_specs = [pl.BlockSpec((tile_m, k0_pad), lambda i: (i, 0))]
    for p in flat_params:
        # Full-array block, constant index_map -> fetched once, resident
        # across all batch tiles (no per-tile weight re-DMA).
        in_specs.append(pl.BlockSpec(p.shape, lambda i: (0, 0)))
    out_specs = pl.BlockSpec((tile_m, n_out_pad), lambda i: (i, 0))

    kernel = functools.partial(_mlp_fused_kernel, num_layers=num_layers)

    return pl.pallas_call(
        kernel,
        out_shape=jax.ShapeDtypeStruct((b_pad, n_out_pad), out_dtype),
        grid=grid,
        in_specs=in_specs,
        out_specs=out_specs,
        compiler_params=pltpu.CompilerParams(
            dimension_semantics=("parallel",),        # lets v7x split batch over 2 TCs
        ),
    )(x_pad, *flat_params)


# ------------------------------ MLP wrapper ----------------------------------
def init_mlp_params(key, n_inputs, n_hidden, n_classes, dtype=jnp.float32):
    """Deterministic init mimicking PyTorch nn.Linear default (uniform +-1/sqrt(fan_in))."""
    dims = [n_inputs] + list(n_hidden) + [n_classes]
    params = []
    for i in range(len(dims) - 1):
        fan_in, fan_out = dims[i], dims[i + 1]
        key, kw, kb = jax.random.split(key, 3)
        bound = 1.0 / (fan_in ** 0.5)
        # Stored as (in, out) == PyTorch weight.T
        w = jax.random.uniform(kw, (fan_in, fan_out), dtype, -bound, bound)
        b = jax.random.uniform(kb, (1, fan_out), dtype, -bound, bound)
        params.append((w, b))
    return params


def prepare_mlp_params(params, compute_dtype=jnp.bfloat16, lane=128):
    """One-time padding + cast of the parameter pytree (hoisted out of forward).

    * Weight K dim: padded only to the sublane quantum (16 bf16 / 8 f32).
    * Hidden-layer N dim: padded to the sublane quantum (== next layer's padded K).
    * Final-layer N dim: padded to 128 so the output HBM store is lane-dense.
    * Weights cast to the compute dtype (bf16 MXU inputs); biases kept in f32.

    Zero padding is mathematically inert for this MLP (padded weight rows/cols
    and bias entries are zero, ReLU(0) == 0).
    """
    sub = _sublane_quantum(compute_dtype)
    n_layers = len(params)
    prepared = []
    for i, (w, b) in enumerate(params):
        din, dout = w.shape
        din_p = _round_up(din, sub)
        dout_p = _round_up(dout, lane if i == n_layers - 1 else sub)
        wp = jnp.pad(w, ((0, din_p - din), (0, dout_p - dout))).astype(compute_dtype)
        bp = jnp.pad(b, ((0, 0), (0, dout_p - dout))).astype(jnp.float32)
        prepared.append((wp, bp))
    return prepared


@functools.partial(jax.jit, static_argnames=("n_out",))
def mlp_forward(x, prepared_params, *, n_out):
    """Matches MLP.forward: hidden layers with ReLU, final linear without.

    `prepared_params` must come from prepare_mlp_params (padded + cast once).
    """
    batch, n_in = x.shape
    compute_dtype = prepared_params[0][0].dtype
    sub = _sublane_quantum(compute_dtype)
    k0_pad = prepared_params[0][0].shape[0]

    # Batch tile: multiple of the sublane quantum, capped at 256 rows.
    tile_m = min(256, _round_up(batch, sub))
    b_pad = _round_up(batch, tile_m)

    x_pad = jnp.pad(x, ((0, b_pad - batch), (0, k0_pad - n_in))).astype(compute_dtype)

    y_pad = _mlp_pallas_call(x_pad, prepared_params, tile_m=tile_m,
                             out_dtype=jnp.float32)
    return y_pad[:batch, :n_out]


def mlp_forward_ref(x, params):
    """Pure-JAX f32 reference for correctness checking."""
    n_layers = len(params)
    for i, (w, b) in enumerate(params):
        x = x @ w + b
        if i != n_layers - 1:
            x = jnp.maximum(x, 0.0)
    return x


# --------------------------------- main ---------------------------------------
if __name__ == "__main__":
    key = jax.random.PRNGKey(0)
    k_param, k_x = jax.random.split(key)

    batch = 8
    n_inputs = 64
    n_hidden = [32, 32]
    n_classes = 16

    params = init_mlp_params(k_param, n_inputs, n_hidden, n_classes)
    # One-time padding / bf16 cast of the parameters (hoisted out of forward).
    prepared = prepare_mlp_params(params, compute_dtype=jnp.bfloat16)

    x = jax.random.normal(k_x, (batch, n_inputs), dtype=jnp.float32)

    out = mlp_forward(x, prepared, n_out=n_classes)
    out = jax.block_until_ready(out)

    ref = mlp_forward_ref(x, params)
    assert out.shape == (batch, n_classes)
    # bf16 MXU inputs with f32 accumulation => small drift vs the f32 reference.
    assert jnp.allclose(out, ref, atol=5e-2, rtol=5e-2), \
        float(jnp.max(jnp.abs(out - ref)))

    print("KERNEL_OK")
</pallas_src>

<mosaic_0001>
module attributes {stable_mosaic.version = 11 : i64} {
  func.func @_mlp_fused_kernel(%arg0: i32, %arg1: memref<16x64xbf16, #tpu.memory_space<vmem>>, %arg2: memref<64x32xbf16, #tpu.memory_space<vmem>>, %arg3: memref<1x32xf32, #tpu.memory_space<vmem>>, %arg4: memref<32x32xbf16, #tpu.memory_space<vmem>>, %arg5: memref<1x32xf32, #tpu.memory_space<vmem>>, %arg6: memref<32x128xbf16, #tpu.memory_space<vmem>>, %arg7: memref<1x128xf32, #tpu.memory_space<vmem>>, %arg8: memref<16x128xf32, #tpu.memory_space<vmem>>) attributes {dimension_semantics = [#tpu.dimension_semantics<parallel>], iteration_bounds = array<i64: 1>, scalar_prefetch = 0 : i64, scratch_operands = 0 : i64, tpu.core_type = #tpu.core_type<tc>, window_params = [{transform_indices = @transform_0, window_bounds = array<i64: 16, 64>}, {pipeline_mode = #tpu.pipeline_mode<synchronous>, transform_indices = @transform_1, window_bounds = array<i64: 64, 32>}, {pipeline_mode = #tpu.pipeline_mode<synchronous>, transform_indices = @transform_2, window_bounds = array<i64: 1, 32>}, {pipeline_mode = #tpu.pipeline_mode<synchronous>, transform_indices = @transform_3, window_bounds = array<i64: 32, 32>}, {pipeline_mode = #tpu.pipeline_mode<synchronous>, transform_indices = @transform_4, window_bounds = array<i64: 1, 32>}, {pipeline_mode = #tpu.pipeline_mode<synchronous>, transform_indices = @transform_5, window_bounds = array<i64: 32, 128>}, {pipeline_mode = #tpu.pipeline_mode<synchronous>, transform_indices = @transform_6, window_bounds = array<i64: 1, 128>}, {transform_indices = @transform_7, window_bounds = array<i64: 16, 128>}]} {
    %c0 = arith.constant 0 : index
    %c0_0 = arith.constant 0 : index
    %0 = vector.load %arg1[%c0, %c0_0] : memref<16x64xbf16, #tpu.memory_space<vmem>>, vector<16x64xbf16>
    %c0_1 = arith.constant 0 : index
    %c0_2 = arith.constant 0 : index
    %1 = vector.load %arg2[%c0_1, %c0_2] : memref<64x32xbf16, #tpu.memory_space<vmem>>, vector<64x32xbf16>
    %cst = arith.constant dense<0.000000e+00> : vector<16x32xf32>
    %2 = tpu.matmul %0, %1, %cst {dimension_numbers = #tpu.dot_dimension_numbers<[1], [0], [0], [1], [0, 0, 1, 1], [], []>} : vector<16x64xbf16>, vector<64x32xbf16>, vector<16x32xf32> -> vector<16x32xf32>
    %c0_3 = arith.constant 0 : index
    %c0_4 = arith.constant 0 : index
    %3 = vector.load %arg3[%c0_3, %c0_4] : memref<1x32xf32, #tpu.memory_space<vmem>>, vector<1x32xf32>
    %4 = vector.broadcast %3 : vector<1x32xf32> to vector<16x32xf32>
    %5 = arith.addf %2, %4 : vector<16x32xf32>
    %cst_5 = arith.constant 0.000000e+00 : f32
    %6 = vector.broadcast %cst_5 : f32 to vector<16x32xf32>
    %7 = arith.maximumf %5, %6 : vector<16x32xf32>
    %8 = arith.truncf %7 : vector<16x32xf32> to vector<16x32xbf16>
    %c0_6 = arith.constant 0 : index
    %c0_7 = arith.constant 0 : index
    %9 = vector.load %arg4[%c0_6, %c0_7] : memref<32x32xbf16, #tpu.memory_space<vmem>>, vector<32x32xbf16>
    %cst_8 = arith.constant dense<0.000000e+00> : vector<16x32xf32>
    %10 = tpu.matmul %8, %9, %cst_8 {dimension_numbers = #tpu.dot_dimension_numbers<[1], [0], [0], [1], [0, 0, 1, 1], [], []>} : vector<16x32xbf16>, vector<32x32xbf16>, vector<16x32xf32> -> vector<16x32xf32>
    %c0_9 = arith.constant 0 : index
    %c0_10 = arith.constant 0 : index
    %11 = vector.load %arg5[%c0_9, %c0_10] : memref<1x32xf32, #tpu.memory_space<vmem>>, vector<1x32xf32>
    %12 = vector.broadcast %11 : vector<1x32xf32> to vector<16x32xf32>
    %13 = arith.addf %10, %12 : vector<16x32xf32>
    %cst_11 = arith.constant 0.000000e+00 : f32
    %14 = vector.broadcast %cst_11 : f32 to vector<16x32xf32>
    %15 = arith.maximumf %13, %14 : vector<16x32xf32>
    %16 = arith.truncf %15 : vector<16x32xf32> to vector<16x32xbf16>
    %c0_12 = arith.constant 0 : index
    %c0_13 = arith.constant 0 : index
    %17 = vector.load %arg6[%c0_12, %c0_13] : memref<32x128xbf16, #tpu.memory_space<vmem>>, vector<32x128xbf16>
    %cst_14 = arith.constant dense<0.000000e+00> : vector<16x128xf32>
    %18 = tpu.matmul %16, %17, %cst_14 {dimension_numbers = #tpu.dot_dimension_numbers<[1], [0], [0], [1], [0, 0, 1, 1], [], []>} : vector<16x32xbf16>, vector<32x128xbf16>, vector<16x128xf32> -> vector<16x128xf32>
    %c0_15 = arith.constant 0 : index
    %c0_16 = arith.constant 0 : index
    %19 = vector.load %arg7[%c0_15, %c0_16] : memref<1x128xf32, #tpu.memory_space<vmem>>, vector<1x128xf32>
    %20 = vector.broadcast %19 : vector<1x128xf32> to vector<16x128xf32>
    %21 = arith.addf %18, %20 : vector<16x128xf32>
    %c0_17 = arith.constant 0 : index
    %c0_18 = arith.constant 0 : index
    %22 = vector.load %arg8[%c0_17, %c0_18] : memref<16x128xf32, #tpu.memory_space<vmem>>, vector<16x128xf32>
    tpu.vector_store %arg8[%c0_17, %c0_18], %21 {strides = array<i32>} : memref<16x128xf32, #tpu.memory_space<vmem>>, vector<16x128xf32>,
    return
  }
  func.func @transform_0(%arg0: i32) -> (i32, i32) {
    %c0_i32 = arith.constant 0 : i32
    %c0_i32_0 = arith.constant 0 : i32
    return %arg0, %c0_i32 : i32, i32
  }
  func.func @transform_1(%arg0: i32) -> (i32, i32) {
    %c0_i32 = arith.constant 0 : i32
    %c0_i32_0 = arith.constant 0 : i32
    %c0_i32_1 = arith.constant 0 : i32
    return %c0_i32, %c0_i32_0 : i32, i32
  }
  func.func @transform_2(%arg0: i32) -> (i32, i32) {
    %c0_i32 = arith.constant 0 : i32
    %c0_i32_0 = arith.constant 0 : i32
    %c0_i32_1 = arith.constant 0 : i32
    return %c0_i32, %c0_i32_0 : i32, i32
  }
  func.func @transform_3(%arg0: i32) -> (i32, i32) {
    %c0_i32 = arith.constant 0 : i32
    %c0_i32_0 = arith.constant 0 : i32
    %c0_i32_1 = arith.constant 0 : i32
    return %c0_i32, %c0_i32_0 : i32, i32
  }
  func.func @transform_4(%arg0: i32) -> (i32, i32) {
    %c0_i32 = arith.constant 0 : i32
    %c0_i32_0 = arith.constant 0 : i32
    %c0_i32_1 = arith.constant 0 : i32
    return %c0_i32, %c0_i32_0 : i32, i32
  }
  func.func @transform_5(%arg0: i32) -> (i32, i32) {
    %c0_i32 = arith.constant 0 : i32
    %c0_i32_0 = arith.constant 0 : i32
    %c0_i32_1 = arith.constant 0 : i32
    return %c0_i32, %c0_i32_0 : i32, i32
  }
  func.func @transform_6(%arg0: i32) -> (i32, i32) {
    %c0_i32 = arith.constant 0 : i32
    %c0_i32_0 = arith.constant 0 : i32
    %c0_i32_1 = arith.constant 0 : i32
    return %c0_i32, %c0_i32_0 : i32, i32
  }
  func.func @transform_7(%arg0: i32) -> (i32, i32) {
    %c0_i32 = arith.constant 0 : i32
    %c0_i32_0 = arith.constant 0 : i32
    return %arg0, %c0_i32 : i32, i32
  }
}

</mosaic_0001>

<bundles_post_ra>
// kernel: mlp_forward.1
= control target key start
LH: loop header
LB: loop body
LE: loop exit
PB: predicated region body
PF: predicated region fallthrough
CT: control target
= control target key end

     0   :  { %v330_v0 = vmov 0.0   ;;  %vm331_vm0 = vmmov 0   ;;  %vm73_vm1 = vcmask 523264   ;;  %vm144_vm2 = vcmask 261120   ;;  %s419_s1 = inlined_call_operand.vmem [shape: bf16[64,32], index: 1, kind: input, shape index: {}]   ;;  %s420_s0 = inlined_call_operand.vmem [shape: bf16[16,64], index: 0, kind: input, shape index: {}]   ;;  %s421_s3 = inlined_call_operand.vmem [shape: bf16[32,32], index: 3, kind: input, shape index: {}]   ;;  %s422_s2 = inlined_call_operand.vmem [shape: f32[1,32], index: 2, kind: input, shape index: {}]   ;;  %s423_s5 = inlined_call_operand.vmem [shape: bf16[32,128], index: 5, kind: input, shape index: {}]   ;;  %s424_s4 = inlined_call_operand.vmem [shape: f32[1,32], index: 4, kind: input, shape index: {}]   ;;  %s425_s6 = inlined_call_operand.vmem [shape: f32[1,128], index: 6, kind: input, shape index: {}]   ;;  %s426_s7 = inlined_call_operand.vmem [shape: f32[16,128], index: 7, kind: output, shape index: {}]  }
   0x1   :  { %291 = vmatprep.subr.bf16.mxu0 %v330_v0  ;;  %v321_v1 = vld [vmem:[%s419_s1 + $0x18] sm:$0xff]   ;;  %299 = vmatprep.mubr.msk.bf16.mxu0 %vm331_vm0, %v330_v0  ;;  %v322_v2 = vld [vmem:[%s419_s1 + $0x10] sm:$0xff]   ;;  %v323_v3 = vld [vmem:[%s419_s1 + $0x8] sm:$0xff]  }
   0x2   :  { %303 = vmatprep.subr.bf16.mxu1 %v330_v0  ;;  %307 = vmatprep.mubr.msk.bf16.mxu1 %vm331_vm0, %v330_v0  ;;  %v324_v4 = vld [vmem:[%s419_s1] sm:$0xff]   ;;  %v326_v6 = vld [vmem:[%s421_s3 + $0x8] sm:$0xff]  }
   0x3   :  { %292 = vmatpush3.bf16.msra.mxu0 %v321_v1  ;;  %v325_v5 = vld [vmem:[%s420_s0] sm:$0xff]   ;;  %304 = vmatpush3.bf16.msra.mxu1 %v326_v6  ;;  %v328_v18 = vld [vmem:[%s423_s5 + $0x8] sm:$0xff]  }
   0x4   :  { %293 = vmatprep.subr.bf16.mxu0 %v330_v0  ;;  %305 = vmatprep.subr.bf16.mxu1 %v330_v0  ;;  %v327_v7 = vld [vmem:[%s421_s3] sm:$0xff]  }
   0x5   :  { %v265_v8 = vld [vmem:[%s422_s2] ss:$0 sm:$0xff] }
   0x6   :  { %v329_v19 = vld [vmem:[%s423_s5] sm:$0xff]  }
   0x7   :  { %294 = vmatpush3.bf16.msra.mxu0 %v322_v2  ;;  %306 = vmatpush3.bf16.msra.mxu1 %v327_v7  ;;  %v272_v20 = vld [vmem:[%s424_s4] ss:$0 sm:$0xff] }
   0x8   :  { %295 = vmatprep.subr.bf16.mxu0 %v330_v0  ;;  %311 = vmatprep.subr.bf16.mxu1 %v330_v0  ;;  %v276_v30 = vld [vmem:[%s425_s6] ss:$0 sm:$0xff] }
   0xb   :  { %296 = vmatpush3.bf16.msra.mxu0 %v323_v3 }
   0xc   :  { %297 = vmatprep.subr.bf16.mxu0 %v330_v0 }
   0xf   :  { %298 = vmatpush3.bf16.msra.mxu0 %v324_v4 }
  0x12   :  { %300 = vmatmul.mubr.msk.bf16.vlgmr.msra.gmra.mxu0 %vm73_vm1, %v325_v5 }
  0xd2   :  { %v111_v9 = vpop.f32.mrf.mxu0 }
  0xd3   :  { %v112_v11 = vadd.f32 %v265_v8, %v111_v9 }
  0xd4   :  { %v301_v10 = vpop.f32.mrf.mxu0 }
  0xd5   :  { %v118_v15 = vmax.f32 %v112_v11, 0.0 }
  0xd6   :  { %v114_v12 = vpop.f32.mrf.mxu0 }
  0xd7   :  { %v115_v13 = vadd.f32 %v265_v8, %v114_v12 }
  0xd8   :  { %v302_v14 = vpop.f32.mrf.mxu0 }
  0xd9   :  { %v119_v16 = vmax.f32 %v115_v13, 0.0 }
  0xdb   :  { %v120_v17 = vpack.c.bf16 %v119_v16, %v118_v15 }
  0xdd   :  { %308 = vmatmul.mubr.msk.bf16.vlgmr.msra.gmra.mxu1 %vm144_vm2, %v120_v17 }
  0xde   :  { %315 = vmatprep.mubr.msk.bf16.mxu1 %vm331_vm0, %v330_v0  ;;  %312 = vmatpush3.bf16.msra.mxu1 %v328_v18 }
  0xdf   :  { %313 = vmatprep.subr.bf16.mxu1 %v330_v0 }
  0xe2   :  { %314 = vmatpush3.bf16.msra.mxu1 %v329_v19 }
 0x19d   :  { %v182_v21 = vpop.f32.mrf.mxu1 }
 0x19e   :  { %v183_v23 = vadd.f32 %v272_v20, %v182_v21 }
 0x19f   :  { %v309_v22 = vpop.f32.mrf.mxu1 }
 0x1a0   :  { %v189_v27 = vmax.f32 %v183_v23, 0.0 }
 0x1a1   :  { %v185_v24 = vpop.f32.mrf.mxu1 }
 0x1a2   :  { %v186_v25 = vadd.f32 %v272_v20, %v185_v24 }
 0x1a3   :  { %v310_v26 = vpop.f32.mrf.mxu1 }
 0x1a4   :  { %v190_v28 = vmax.f32 %v186_v25, 0.0 }
 0x1a6   :  { %v191_v29 = vpack.c.bf16 %v190_v28, %v189_v27 }
 0x1a8   :  { %316 = vmatmul.mubr.msk.bf16.vlgmr.msra.gmra.mxu1 %vm144_vm2, %v191_v29 }
 0x268   :  { %v252_v31 = vpop.f32.mrf.mxu1 }
 0x269   :  { %v253_v32 = vadd.f32 %v276_v30, %v252_v31 }
 0x26a   :  { %v317_v33 = vpop.f32.mrf.mxu1 }
 0x26b   :  { %259 = vst [vmem:[%s426_s7] sm:$0xff] %v253_v32 }
 0x26c   :  { %v255_v34 = vpop.f32.mrf.mxu1 }
 0x26d   :  { %v256_v35 = vadd.f32 %v276_v30, %v255_v34 }
 0x26e   :  { %v318_v36 = vpop.f32.mrf.mxu1 }
 0x26f   :  { %260 = vst [vmem:[%s426_s7 + $0x8] sm:$0xff] %v256_v35 }

</bundles_post_ra>
